<compile_context>
chip_gen: v7x
topology: tpu7x:2x2x1
jax: 0.10.0
libtpu: 0.0.40
codegen_flags: <defaults>
</compile_context>

<pallas_src>
import jax
import jax.numpy as jnp
from jax.experimental import pallas as pl
from jax.experimental.pallas import tpu as pltpu

_SQRT_HALF = 0.7071067811865476
_LN_EPS = 1e-5


def _gelu_exact(x):
    # PyTorch nn.GELU() default = exact erf-based GELU.
    return 0.5 * x * (1.0 + jax.lax.erf(x * _SQRT_HALF))


def _round8(n):
    return -(-n // 8) * 8


# ----------------------------- packed-parameter layout -----------------------------

def _layout(cfg, batch):
    L, N, P = cfg["seq_len"], cfg["enc_in"], cfg["pred_len"]
    s, Ht, F, E = cfg["sampling"], cfg["d_model"], cfg["d_ff"], cfg["e_layers"]
    SH = s * Ht
    BN, BF = batch * N, batch * F
    # row offsets inside one layer's block of the weight slab (8-row aligned)
    o_wt1 = 0
    o_bt1 = o_wt1 + _round8(L)
    o_wt2 = o_bt1 + _round8(1)
    o_bt2 = o_wt2 + _round8(SH)
    o_wc1 = o_bt2 + _round8(1)
    o_wc2 = o_wc1 + _round8(BF)
    layer_rows = o_wc2 + _round8(BN)
    o_wp = E * layer_rows
    o_bp = o_wp + _round8(L)
    total_rows = o_bp + _round8(1)
    return dict(
        L=L, N=N, P=P, E=E, s=s, Ht=Ht, F=F, SH=SH, B=batch, BN=BN, BF=BF,
        o_wt1=o_wt1, o_bt1=o_bt1, o_wt2=o_wt2, o_bt2=o_bt2,
        o_wc1=o_wc1, o_wc2=o_wc2, layer_rows=layer_rows,
        o_wp=o_wp, o_bp=o_bp, total_rows=total_rows,
        wcols=max(SH, L, BN, BF, P), ccols=4 * E + 2)


def pack_params(params, cfg, batch):
    """Pack all parameters into two slabs:
       * wslab [total_rows, wcols]: row-oriented weights + row-broadcast biases
       * cslab [B*N, 4*E+2]       : column-oriented (per-row) LN params / biases
       Temporal per-group Linears are folded into L-wide sparsified matrices
       (exact 0/1 embedding); channel Linears are pre-transposed block-diagonal
       over batch so the kernel never changes layout."""
    lo = _layout(cfg, batch)
    L, P, E = lo["L"], lo["P"], lo["E"]
    s, Ht, SH = lo["s"], lo["Ht"], lo["SH"]
    B, BN, BF = lo["B"], lo["BN"], lo["BF"]

    wslab = jnp.zeros((lo["total_rows"], lo["wcols"]), jnp.float32)
    cslab = jnp.zeros((BN, lo["ccols"]), jnp.float32)
    eye_b = jnp.eye(B, dtype=jnp.float32)

    for e, p in enumerate(params["blocks"]):
        base = e * lo["layer_rows"]
        # -- fold factorized temporal mixing into L-wide weights --
        wt1 = jnp.zeros((L, SH), jnp.float32)
        wt2 = jnp.zeros((SH, L), jnp.float32)
        bt1 = jnp.zeros((SH,), jnp.float32)
        bt2 = jnp.zeros((L,), jnp.float32)
        for idx in range(s):
            wt1 = wt1.at[idx::s, idx * Ht:(idx + 1) * Ht].set(p["wt1"][idx])
            bt1 = bt1.at[idx * Ht:(idx + 1) * Ht].set(p["bt1"][idx][0])
            wt2 = wt2.at[idx * Ht:(idx + 1) * Ht, idx::s].set(p["wt2"][idx])
            bt2 = bt2.at[idx::s].set(p["bt2"][idx][0])
        # -- channel mixing: pre-transposed, block-diagonal over batch --
        wc1t = jnp.kron(eye_b, p["wc1"].T)   # [B*F, B*N]
        wc2t = jnp.kron(eye_b, p["wc2"].T)   # [B*N, B*F]

        wslab = wslab.at[base + lo["o_wt1"]:base + lo["o_wt1"] + L, :SH].set(wt1)
        wslab = wslab.at[base + lo["o_bt1"], :SH].set(bt1)
        wslab = wslab.at[base + lo["o_wt2"]:base + lo["o_wt2"] + SH, :L].set(wt2)
        wslab = wslab.at[base + lo["o_bt2"], :L].set(bt2)
        wslab = wslab.at[base + lo["o_wc1"]:base + lo["o_wc1"] + BF, :BN].set(wc1t)
        wslab = wslab.at[base + lo["o_wc2"]:base + lo["o_wc2"] + BN, :BF].set(wc2t)

        cslab = cslab.at[:, 4 * e + 0].set(jnp.tile(p["ln_g"][0], B))
        cslab = cslab.at[:, 4 * e + 1].set(jnp.tile(p["ln_b"][0], B))
        cslab = cslab.at[:BF, 4 * e + 2].set(jnp.tile(p["bc1"][0], B))
        cslab = cslab.at[:, 4 * e + 3].set(jnp.tile(p["bc2"][0], B))

    wslab = wslab.at[lo["o_wp"]:lo["o_wp"] + L, :P].set(params["wp"])
    wslab = wslab.at[lo["o_bp"], :P].set(params["bp"][0])
    cslab = cslab.at[:, 4 * E + 0].set(jnp.tile(params["ln_g"][0], B))
    cslab = cslab.at[:, 4 * E + 1].set(jnp.tile(params["ln_b"][0], B))
    return wslab, cslab, lo


# ----------------------------- fused Pallas kernel -----------------------------

def _make_kernel(lo):
    L, N, P, E = lo["L"], lo["N"], lo["P"], lo["E"]
    SH, B, BN, BF = lo["SH"], lo["B"], lo["BN"], lo["BF"]

    def ln_channels(xt, g, b):
        # LayerNorm over the channel (N) axis in the channel-major layout.
        # xt: [B*N, L]; rows are contiguous blocks of N channels per batch.
        x3 = xt.reshape(B, N, L)
        mean = jnp.mean(x3, axis=1, keepdims=True)
        xc = x3 - mean
        var = jnp.mean(xc * xc, axis=1, keepdims=True)
        xn = (xc * jax.lax.rsqrt(var + _LN_EPS)).reshape(BN, L)
        return xn * g + b                          # g, b: [B*N, 1]

    def mm(a, b):
        return jnp.dot(a, b, preferred_element_type=jnp.float32)

    def kernel(x_ref, w_ref, c_ref, o_ref):
        xt = x_ref[...]                            # [B*N, L]  (channel-major)
        for e in range(E):                         # static unroll over layers
            wb = e * lo["layer_rows"]
            cb = 4 * e
            g   = c_ref[:, cb + 0:cb + 1]          # [BN, 1]
            b   = c_ref[:, cb + 1:cb + 2]          # [BN, 1]
            bc1 = c_ref[0:BF, cb + 2:cb + 3]       # [BF, 1]
            bc2 = c_ref[:, cb + 3:cb + 4]          # [BN, 1]
            wt1 = w_ref[wb + lo["o_wt1"]:wb + lo["o_wt1"] + L, 0:SH]    # [L, SH]
            bt1 = w_ref[wb + lo["o_bt1"]:wb + lo["o_bt1"] + 1, 0:SH]    # [1, SH]
            wt2 = w_ref[wb + lo["o_wt2"]:wb + lo["o_wt2"] + SH, 0:L]    # [SH, L]
            bt2 = w_ref[wb + lo["o_bt2"]:wb + lo["o_bt2"] + 1, 0:L]     # [1, L]
            wc1 = w_ref[wb + lo["o_wc1"]:wb + lo["o_wc1"] + BF, 0:BN]   # [BF, BN]
            wc2 = w_ref[wb + lo["o_wc2"]:wb + lo["o_wc2"] + BN, 0:BF]   # [BN, BF]

            # ---- tokens (temporal) mixing: already in the [B*N, L] layout ----
            y = ln_channels(xt, g, b)                        # [BN, L]
            h = _gelu_exact(mm(y, wt1) + bt1)                # [BN, SH]
            tok = mm(h, wt2) + bt2                           # [BN, L]

            # ---- residual + channel mixing (block-diag weights, same layout) ----
            u = tok + xt                                     # [BN, L]
            z = ln_channels(u, g, b)                         # [BN, L]
            cmid = _gelu_exact(mm(wc1, z) + bc1)             # [BF, L]
            xt = u + mm(wc2, cmid) + bc2                     # [BN, L]

        # ---- final LayerNorm + ChannelProjection (shared Linear over time) ----
        gf = c_ref[:, 4 * E + 0:4 * E + 1]
        bf = c_ref[:, 4 * E + 1:4 * E + 2]
        xf = ln_channels(xt, gf, bf)                         # [BN, L]
        wp = w_ref[lo["o_wp"]:lo["o_wp"] + L, 0:P]           # [L, P]
        bp = w_ref[lo["o_bp"]:lo["o_bp"] + 1, 0:P]           # [1, P]
        o_ref[...] = mm(xf, wp) + bp                         # [BN, P]

    return kernel


# ----------------------------- wrapper -----------------------------

def mtsmixer_forward(history_data, wslab, cslab, cfg):
    # history_data: [B, L, N, C]  ->  output [B, pred_len, N, 1]
    x = history_data[..., 0]                                 # [B, L, N]
    B, L, N = x.shape
    lo = _layout(cfg, B)
    P, BN = lo["P"], lo["BN"]
    assert cslab.shape[0] == BN, "parameter slabs were packed for a different batch"

    # layout plumbing (wrapper-side): channel-major [B*N, L]
    xt = jnp.transpose(x, (0, 2, 1)).reshape(BN, L)

    out_t = pl.pallas_call(
        _make_kernel(lo),
        out_shape=jax.ShapeDtypeStruct((BN, P), jnp.float32),
        grid=(1,),
        in_specs=[
            pl.BlockSpec((BN, L), lambda i: (0, 0)),                       # activations
            pl.BlockSpec((lo["total_rows"], lo["wcols"]), lambda i: (0, 0)),  # weight slab
            pl.BlockSpec((BN, lo["ccols"]), lambda i: (0, 0)),             # bias/LN slab
        ],
        out_specs=pl.BlockSpec((BN, P), lambda i: (0, 0)),
        compiler_params=pltpu.CompilerParams(dimension_semantics=("arbitrary",)),
    )(xt, wslab, cslab)

    out = jnp.transpose(out_t.reshape(B, N, P), (0, 2, 1))   # [B, P, N]
    return out[..., None]                                    # [B, P, N, 1]


# ----------------------------- parameters -----------------------------

def init_params(key, cfg):
    L, N = cfg["seq_len"], cfg["enc_in"]
    Ht, Hc, P = cfg["d_model"], cfg["d_ff"], cfg["pred_len"]
    s = cfg["sampling"]
    Ls = L // s
    keys = iter(jax.random.split(key, 64))

    def lin(k, din, dout):
        # nn.Linear(din, dout); stored pre-transposed as [din, dout], bias as [1, dout]
        k1, k2 = jax.random.split(k)
        bound = 1.0 / float(din) ** 0.5
        w = jax.random.uniform(k1, (din, dout), jnp.float32, -bound, bound)
        b = jax.random.uniform(k2, (1, dout), jnp.float32, -bound, bound)
        return w, b

    blocks = []
    for _ in range(cfg["e_layers"]):
        wt1, bt1, wt2, bt2 = [], [], [], []
        for _ in range(s):
            w1, b1 = lin(next(keys), Ls, Ht)
            w2, b2 = lin(next(keys), Ht, Ls)
            wt1.append(w1); bt1.append(b1); wt2.append(w2); bt2.append(b2)
        wc1, bc1 = lin(next(keys), N, Hc)
        wc2, bc2 = lin(next(keys), Hc, N)
        blocks.append(dict(
            ln_g=jnp.ones((1, N), jnp.float32),
            ln_b=jnp.zeros((1, N), jnp.float32),
            wt1=jnp.stack(wt1), bt1=jnp.stack(bt1),
            wt2=jnp.stack(wt2), bt2=jnp.stack(bt2),
            wc1=wc1, bc1=bc1, wc2=wc2, bc2=bc2,
        ))
    wp, bp = lin(next(keys), L, P)
    return dict(blocks=blocks,
                ln_g=jnp.ones((1, N), jnp.float32),
                ln_b=jnp.zeros((1, N), jnp.float32),
                wp=wp, bp=bp)


# ----------------------------- pure-JAX reference -----------------------------

def _layernorm_last(x, g, b):
    mean = jnp.mean(x, axis=-1, keepdims=True)
    xc = x - mean
    var = jnp.mean(xc * xc, axis=-1, keepdims=True)
    return xc * jax.lax.rsqrt(var + _LN_EPS) * g + b


def reference_forward(history_data, params, cfg):
    x = history_data[..., 0]
    s = cfg["sampling"]
    for p in params["blocks"]:
        y = _layernorm_last(x, p["ln_g"], p["ln_b"])
        yt = jnp.transpose(y, (0, 2, 1))                     # [B, N, L]
        outs = []
        for idx in range(s):
            sub = yt[:, :, idx::s]
            h = _gelu_exact(sub @ p["wt1"][idx] + p["bt1"][idx])
            outs.append(h @ p["wt2"][idx] + p["bt2"][idx])
        merged = jnp.zeros_like(yt)
        for idx in range(s):
            merged = merged.at[:, :, idx::s].set(outs[idx])
        y = jnp.transpose(merged, (0, 2, 1))
        y = y + x
        res = y
        z = _layernorm_last(y, p["ln_g"], p["ln_b"])
        h = _gelu_exact(z @ p["wc1"] + p["bc1"])
        x = res + h @ p["wc2"] + p["bc2"]
    x = _layernorm_last(x, params["ln_g"], params["ln_b"])
    xt = jnp.transpose(x, (0, 2, 1))
    y = xt @ params["wp"] + params["bp"]
    y = jnp.transpose(y, (0, 2, 1))
    return y[..., None]


# ----------------------------- main -----------------------------

if __name__ == "__main__":
    cfg = dict(seq_len=16, pred_len=8, enc_in=8, dec_in=8, d_model=32, d_ff=4,
               e_layers=2, sampling=2, fac_T=True, fac_C=True,
               use_norm=True, individual=False, rev=False)
    key = jax.random.PRNGKey(0)
    kparam, kdata = jax.random.split(key)
    params = init_params(kparam, cfg)

    B, C = 2, 3
    wslab, cslab, _ = pack_params(params, cfg, B)
    history_data = jax.random.normal(
        kdata, (B, cfg["seq_len"], cfg["enc_in"], C), jnp.float32)

    fwd = jax.jit(lambda hd, w, c: mtsmixer_forward(hd, w, c, cfg))
    out = fwd(history_data, wslab, cslab)
    out = jax.block_until_ready(out)
    assert out.shape == (B, cfg["pred_len"], cfg["enc_in"], 1), out.shape

    ref = reference_forward(history_data, params, cfg)
    if not jnp.allclose(out, ref, atol=1e-3, rtol=1e-3):
        raise SystemExit("kernel/reference mismatch: max abs err = %e"
                         % float(jnp.max(jnp.abs(out - ref))))
    print("KERNEL_OK")
</pallas_src>

<mosaic_0001>
module attributes {stable_mosaic.version = 11 : i64} {
  func.func @kernel(%arg0: i32, %arg1: memref<16x16xf32, #tpu.memory_space<vmem>>, %arg2: memref<264x64xf32, #tpu.memory_space<vmem>>, %arg3: memref<16x10xf32, #tpu.memory_space<vmem>>, %arg4: memref<16x8xf32, #tpu.memory_space<vmem>>) attributes {dimension_semantics = [#tpu.dimension_semantics<arbitrary>], iteration_bounds = array<i64: 1>, scalar_prefetch = 0 : i64, scratch_operands = 0 : i64, tpu.core_type = #tpu.core_type<tc>, window_params = [{pipeline_mode = #tpu.pipeline_mode<synchronous>, transform_indices = @transform_0, window_bounds = array<i64: 16, 16>}, {pipeline_mode = #tpu.pipeline_mode<synchronous>, transform_indices = @transform_1, window_bounds = array<i64: 264, 64>}, {pipeline_mode = #tpu.pipeline_mode<synchronous>, transform_indices = @transform_2, window_bounds = array<i64: 16, 10>}, {pipeline_mode = #tpu.pipeline_mode<synchronous>, transform_indices = @transform_3, window_bounds = array<i64: 16, 8>}]} {
    %c0 = arith.constant 0 : index
    %c0_0 = arith.constant 0 : index
    %0 = vector.load %arg1[%c0, %c0_0] : memref<16x16xf32, #tpu.memory_space<vmem>>, vector<16x16xf32>
    %c0_1 = arith.constant 0 : index
    %c0_2 = arith.constant 0 : index
    %1 = vector.load %arg3[%c0_1, %c0_2] : memref<16x10xf32, #tpu.memory_space<vmem>>, vector<16x1xf32>
    %c0_3 = arith.constant 0 : index
    %c1 = arith.constant 1 : index
    %2 = vector.load %arg3[%c0_3, %c1] : memref<16x10xf32, #tpu.memory_space<vmem>>, vector<16x1xf32>
    %c0_4 = arith.constant 0 : index
    %c2 = arith.constant 2 : index
    %3 = vector.load %arg3[%c0_4, %c2] : memref<16x10xf32, #tpu.memory_space<vmem>>, vector<8x1xf32>
    %c0_5 = arith.constant 0 : index
    %c3 = arith.constant 3 : index
    %4 = vector.load %arg3[%c0_5, %c3] : memref<16x10xf32, #tpu.memory_space<vmem>>, vector<16x1xf32>
    %c0_6 = arith.constant 0 : index
    %c0_7 = arith.constant 0 : index
    %5 = vector.load %arg2[%c0_6, %c0_7] : memref<264x64xf32, #tpu.memory_space<vmem>>, vector<16x64xf32>
    %c16 = arith.constant 16 : index
    %c0_8 = arith.constant 0 : index
    %6 = vector.load %arg2[%c16, %c0_8] : memref<264x64xf32, #tpu.memory_space<vmem>>, vector<1x64xf32>
    %c24 = arith.constant 24 : index
    %c0_9 = arith.constant 0 : index
    %7 = vector.load %arg2[%c24, %c0_9] : memref<264x64xf32, #tpu.memory_space<vmem>>, vector<64x16xf32>
    %c88 = arith.constant 88 : index
    %c0_10 = arith.constant 0 : index
    %8 = vector.load %arg2[%c88, %c0_10] : memref<264x64xf32, #tpu.memory_space<vmem>>, vector<1x16xf32>
    %c96 = arith.constant 96 : index
    %c0_11 = arith.constant 0 : index
    %9 = vector.load %arg2[%c96, %c0_11] : memref<264x64xf32, #tpu.memory_space<vmem>>, vector<8x16xf32>
    %c104 = arith.constant 104 : index
    %c0_12 = arith.constant 0 : index
    %10 = vector.load %arg2[%c104, %c0_12] : memref<264x64xf32, #tpu.memory_space<vmem>>, vector<16x8xf32>
    %11 = vector.shape_cast %0 : vector<16x16xf32> to vector<2x8x16xf32>
    %cst = arith.constant dense<0.000000e+00> : vector<2x16xf32>
    %12 = vector.multi_reduction <add>, %11, %cst [1] : vector<2x8x16xf32> to vector<2x16xf32>
    %13 = vector.shape_cast %12 : vector<2x16xf32> to vector<2x1x16xf32>
    %cst_13 = arith.constant 8.000000e+00 : f32
    %14 = vector.broadcast %cst_13 : f32 to vector<2x1x16xf32>
    %15 = arith.divf %13, %14 : vector<2x1x16xf32>
    %16 = vector.broadcast %15 : vector<2x1x16xf32> to vector<2x8x16xf32>
    %17 = arith.subf %11, %16 : vector<2x8x16xf32>
    %18 = arith.mulf %17, %17 : vector<2x8x16xf32>
    %cst_14 = arith.constant dense<0.000000e+00> : vector<2x16xf32>
    %19 = vector.multi_reduction <add>, %18, %cst_14 [1] : vector<2x8x16xf32> to vector<2x16xf32>
    %20 = vector.shape_cast %19 : vector<2x16xf32> to vector<2x1x16xf32>
    %cst_15 = arith.constant 8.000000e+00 : f32
    %21 = vector.broadcast %cst_15 : f32 to vector<2x1x16xf32>
    %22 = arith.divf %20, %21 : vector<2x1x16xf32>
    %cst_16 = arith.constant 9.99999974E-6 : f32
    %23 = vector.broadcast %cst_16 : f32 to vector<2x1x16xf32>
    %24 = arith.addf %22, %23 : vector<2x1x16xf32>
    %25 = math.rsqrt %24 : vector<2x1x16xf32>
    %26 = vector.broadcast %25 : vector<2x1x16xf32> to vector<2x8x16xf32>
    %27 = arith.mulf %17, %26 : vector<2x8x16xf32>
    %28 = vector.shape_cast %27 : vector<2x8x16xf32> to vector<16x16xf32>
    %29 = vector.broadcast %1 : vector<16x1xf32> to vector<16x16xf32>
    %30 = arith.mulf %28, %29 : vector<16x16xf32>
    %31 = vector.broadcast %2 : vector<16x1xf32> to vector<16x16xf32>
    %32 = arith.addf %30, %31 : vector<16x16xf32>
    %cst_17 = arith.constant dense<0.000000e+00> : vector<16x64xf32>
    %33 = tpu.matmul %32, %5, %cst_17 {dimension_numbers = #tpu.dot_dimension_numbers<[1], [0], [0], [1], [0, 0, 1, 1], [], []>} : vector<16x16xf32>, vector<16x64xf32>, vector<16x64xf32> -> vector<16x64xf32>
    %34 = vector.broadcast %6 : vector<1x64xf32> to vector<16x64xf32>
    %35 = arith.addf %33, %34 : vector<16x64xf32>
    %cst_18 = arith.constant 5.000000e-01 : f32
    %36 = vector.broadcast %cst_18 : f32 to vector<16x64xf32>
    %37 = arith.mulf %36, %35 : vector<16x64xf32>
    %cst_19 = arith.constant 0.707106769 : f32
    %38 = vector.broadcast %cst_19 : f32 to vector<16x64xf32>
    %39 = arith.mulf %35, %38 : vector<16x64xf32>
    %40 = math.erf %39 : vector<16x64xf32>
    %cst_20 = arith.constant 1.000000e+00 : f32
    %41 = vector.broadcast %cst_20 : f32 to vector<16x64xf32>
    %42 = arith.addf %41, %40 : vector<16x64xf32>
    %43 = arith.mulf %37, %42 : vector<16x64xf32>
    %cst_21 = arith.constant dense<0.000000e+00> : vector<16x16xf32>
    %44 = tpu.matmul %43, %7, %cst_21 {dimension_numbers = #tpu.dot_dimension_numbers<[1], [0], [0], [1], [0, 0, 1, 1], [], []>} : vector<16x64xf32>, vector<64x16xf32>, vector<16x16xf32> -> vector<16x16xf32>
    %45 = vector.broadcast %8 : vector<1x16xf32> to vector<16x16xf32>
    %46 = arith.addf %44, %45 : vector<16x16xf32>
    %47 = arith.addf %46, %0 : vector<16x16xf32>
    %48 = vector.shape_cast %47 : vector<16x16xf32> to vector<2x8x16xf32>
    %cst_22 = arith.constant dense<0.000000e+00> : vector<2x16xf32>
    %49 = vector.multi_reduction <add>, %48, %cst_22 [1] : vector<2x8x16xf32> to vector<2x16xf32>
    %50 = vector.shape_cast %49 : vector<2x16xf32> to vector<2x1x16xf32>
    %cst_23 = arith.constant 8.000000e+00 : f32
    %51 = vector.broadcast %cst_23 : f32 to vector<2x1x16xf32>
    %52 = arith.divf %50, %51 : vector<2x1x16xf32>
    %53 = vector.broadcast %52 : vector<2x1x16xf32> to vector<2x8x16xf32>
    %54 = arith.subf %48, %53 : vector<2x8x16xf32>
    %55 = arith.mulf %54, %54 : vector<2x8x16xf32>
    %cst_24 = arith.constant dense<0.000000e+00> : vector<2x16xf32>
    %56 = vector.multi_reduction <add>, %55, %cst_24 [1] : vector<2x8x16xf32> to vector<2x16xf32>
    %57 = vector.shape_cast %56 : vector<2x16xf32> to vector<2x1x16xf32>
    %cst_25 = arith.constant 8.000000e+00 : f32
    %58 = vector.broadcast %cst_25 : f32 to vector<2x1x16xf32>
    %59 = arith.divf %57, %58 : vector<2x1x16xf32>
    %cst_26 = arith.constant 9.99999974E-6 : f32
    %60 = vector.broadcast %cst_26 : f32 to vector<2x1x16xf32>
    %61 = arith.addf %59, %60 : vector<2x1x16xf32>
    %62 = math.rsqrt %61 : vector<2x1x16xf32>
    %63 = vector.broadcast %62 : vector<2x1x16xf32> to vector<2x8x16xf32>
    %64 = arith.mulf %54, %63 : vector<2x8x16xf32>
    %65 = vector.shape_cast %64 : vector<2x8x16xf32> to vector<16x16xf32>
    %66 = vector.broadcast %1 : vector<16x1xf32> to vector<16x16xf32>
    %67 = arith.mulf %65, %66 : vector<16x16xf32>
    %68 = vector.broadcast %2 : vector<16x1xf32> to vector<16x16xf32>
    %69 = arith.addf %67, %68 : vector<16x16xf32>
    %cst_27 = arith.constant dense<0.000000e+00> : vector<8x16xf32>
    %70 = tpu.matmul %9, %69, %cst_27 {dimension_numbers = #tpu.dot_dimension_numbers<[1], [0], [0], [1], [0, 0, 1, 1], [], []>} : vector<8x16xf32>, vector<16x16xf32>, vector<8x16xf32> -> vector<8x16xf32>
    %71 = vector.broadcast %3 : vector<8x1xf32> to vector<8x16xf32>
    %72 = arith.addf %70, %71 : vector<8x16xf32>
    %cst_28 = arith.constant 5.000000e-01 : f32
    %73 = vector.broadcast %cst_28 : f32 to vector<8x16xf32>
    %74 = arith.mulf %73, %72 : vector<8x16xf32>
    %cst_29 = arith.constant 0.707106769 : f32
    %75 = vector.broadcast %cst_29 : f32 to vector<8x16xf32>
    %76 = arith.mulf %72, %75 : vector<8x16xf32>
    %77 = math.erf %76 : vector<8x16xf32>
    %cst_30 = arith.constant 1.000000e+00 : f32
    %78 = vector.broadcast %cst_30 : f32 to vector<8x16xf32>
    %79 = arith.addf %78, %77 : vector<8x16xf32>
    %80 = arith.mulf %74, %79 : vector<8x16xf32>
    %cst_31 = arith.constant dense<0.000000e+00> : vector<16x16xf32>
    %81 = tpu.matmul %10, %80, %cst_31 {dimension_numbers = #tpu.dot_dimension_numbers<[1], [0], [0], [1], [0, 0, 1, 1], [], []>} : vector<16x8xf32>, vector<8x16xf32>, vector<16x16xf32> -> vector<16x16xf32>
    %82 = arith.addf %47, %81 : vector<16x16xf32>
    %83 = vector.broadcast %4 : vector<16x1xf32> to vector<16x16xf32>
    %84 = arith.addf %82, %83 : vector<16x16xf32>
    %c0_32 = arith.constant 0 : index
    %c4 = arith.constant 4 : index
    %85 = vector.load %arg3[%c0_32, %c4] : memref<16x10xf32, #tpu.memory_space<vmem>>, vector<16x1xf32>
    %c0_33 = arith.constant 0 : index
    %c5 = arith.constant 5 : index
    %86 = vector.load %arg3[%c0_33, %c5] : memref<16x10xf32, #tpu.memory_space<vmem>>, vector<16x1xf32>
    %c0_34 = arith.constant 0 : index
    %c6 = arith.constant 6 : index
    %87 = vector.load %arg3[%c0_34, %c6] : memref<16x10xf32, #tpu.memory_space<vmem>>, vector<8x1xf32>
    %c0_35 = arith.constant 0 : index
    %c7 = arith.constant 7 : index
    %88 = vector.load %arg3[%c0_35, %c7] : memref<16x10xf32, #tpu.memory_space<vmem>>, vector<16x1xf32>
    %c120 = arith.constant 120 : index
    %c0_36 = arith.constant 0 : index
    %89 = vector.load %arg2[%c120, %c0_36] : memref<264x64xf32, #tpu.memory_space<vmem>>, vector<16x64xf32>
    %c136 = arith.constant 136 : index
    %c0_37 = arith.constant 0 : index
    %90 = vector.load %arg2[%c136, %c0_37] : memref<264x64xf32, #tpu.memory_space<vmem>>, vector<1x64xf32>
    %c144 = arith.constant 144 : index
    %c0_38 = arith.constant 0 : index
    %91 = vector.load %arg2[%c144, %c0_38] : memref<264x64xf32, #tpu.memory_space<vmem>>, vector<64x16xf32>
    %c208 = arith.constant 208 : index
    %c0_39 = arith.constant 0 : index
    %92 = vector.load %arg2[%c208, %c0_39] : memref<264x64xf32, #tpu.memory_space<vmem>>, vector<1x16xf32>
    %c216 = arith.constant 216 : index
    %c0_40 = arith.constant 0 : index
    %93 = vector.load %arg2[%c216, %c0_40] : memref<264x64xf32, #tpu.memory_space<vmem>>, vector<8x16xf32>
    %c224 = arith.constant 224 : index
    %c0_41 = arith.constant 0 : index
    %94 = vector.load %arg2[%c224, %c0_41] : memref<264x64xf32, #tpu.memory_space<vmem>>, vector<16x8xf32>
    %95 = vector.shape_cast %84 : vector<16x16xf32> to vector<2x8x16xf32>
    %cst_42 = arith.constant dense<0.000000e+00> : vector<2x16xf32>
    %96 = vector.multi_reduction <add>, %95, %cst_42 [1] : vector<2x8x16xf32> to vector<2x16xf32>
    %97 = vector.shape_cast %96 : vector<2x16xf32> to vector<2x1x16xf32>
    %cst_43 = arith.constant 8.000000e+00 : f32
    %98 = vector.broadcast %cst_43 : f32 to vector<2x1x16xf32>
    %99 = arith.divf %97, %98 : vector<2x1x16xf32>
    %100 = vector.broadcast %99 : vector<2x1x16xf32> to vector<2x8x16xf32>
    %101 = arith.subf %95, %100 : vector<2x8x16xf32>
    %102 = arith.mulf %101, %101 : vector<2x8x16xf32>
    %cst_44 = arith.constant dense<0.000000e+00> : vector<2x16xf32>
    %103 = vector.multi_reduction <add>, %102, %cst_44 [1] : vector<2x8x16xf32> to vector<2x16xf32>
    %104 = vector.shape_cast %103 : vector<2x16xf32> to vector<2x1x16xf32>
    %cst_45 = arith.constant 8.000000e+00 : f32
    %105 = vector.broadcast %cst_45 : f32 to vector<2x1x16xf32>
    %106 = arith.divf %104, %105 : vector<2x1x16xf32>
    %cst_46 = arith.constant 9.99999974E-6 : f32
    %107 = vector.broadcast %cst_46 : f32 to vector<2x1x16xf32>
    %108 = arith.addf %106, %107 : vector<2x1x16xf32>
    %109 = math.rsqrt %108 : vector<2x1x16xf32>
    %110 = vector.broadcast %109 : vector<2x1x16xf32> to vector<2x8x16xf32>
    %111 = arith.mulf %101, %110 : vector<2x8x16xf32>
    %112 = vector.shape_cast %111 : vector<2x8x16xf32> to vector<16x16xf32>
    %113 = vector.broadcast %85 : vector<16x1xf32> to vector<16x16xf32>
    %114 = arith.mulf %112, %113 : vector<16x16xf32>
    %115 = vector.broadcast %86 : vector<16x1xf32> to vector<16x16xf32>
    %116 = arith.addf %114, %115 : vector<16x16xf32>
    %cst_47 = arith.constant dense<0.000000e+00> : vector<16x64xf32>
    %117 = tpu.matmul %116, %89, %cst_47 {dimension_numbers = #tpu.dot_dimension_numbers<[1], [0], [0], [1], [0, 0, 1, 1], [], []>} : vector<16x16xf32>, vector<16x64xf32>, vector<16x64xf32> -> vector<16x64xf32>
    %118 = vector.broadcast %90 : vector<1x64xf32> to vector<16x64xf32>
    %119 = arith.addf %117, %118 : vector<16x64xf32>
    %cst_48 = arith.constant 5.000000e-01 : f32
    %120 = vector.broadcast %cst_48 : f32 to vector<16x64xf32>
    %121 = arith.mulf %120, %119 : vector<16x64xf32>
    %cst_49 = arith.constant 0.707106769 : f32
    %122 = vector.broadcast %cst_49 : f32 to vector<16x64xf32>
    %123 = arith.mulf %119, %122 : vector<16x64xf32>
    %124 = math.erf %123 : vector<16x64xf32>
    %cst_50 = arith.constant 1.000000e+00 : f32
    %125 = vector.broadcast %cst_50 : f32 to vector<16x64xf32>
    %126 = arith.addf %125, %124 : vector<16x64xf32>
    %127 = arith.mulf %121, %126 : vector<16x64xf32>
    %cst_51 = arith.constant dense<0.000000e+00> : vector<16x16xf32>
    %128 = tpu.matmul %127, %91, %cst_51 {dimension_numbers = #tpu.dot_dimension_numbers<[1], [0], [0], [1], [0, 0, 1, 1], [], []>} : vector<16x64xf32>, vector<64x16xf32>, vector<16x16xf32> -> vector<16x16xf32>
    %129 = vector.broadcast %92 : vector<1x16xf32> to vector<16x16xf32>
    %130 = arith.addf %128, %129 : vector<16x16xf32>
    %131 = arith.addf %130, %84 : vector<16x16xf32>
    %132 = vector.shape_cast %131 : vector<16x16xf32> to vector<2x8x16xf32>
    %cst_52 = arith.constant dense<0.000000e+00> : vector<2x16xf32>
    %133 = vector.multi_reduction <add>, %132, %cst_52 [1] : vector<2x8x16xf32> to vector<2x16xf32>
    %134 = vector.shape_cast %133 : vector<2x16xf32> to vector<2x1x16xf32>
    %cst_53 = arith.constant 8.000000e+00 : f32
    %135 = vector.broadcast %cst_53 : f32 to vector<2x1x16xf32>
    %136 = arith.divf %134, %135 : vector<2x1x16xf32>
    %137 = vector.broadcast %136 : vector<2x1x16xf32> to vector<2x8x16xf32>
    %138 = arith.subf %132, %137 : vector<2x8x16xf32>
    %139 = arith.mulf %138, %138 : vector<2x8x16xf32>
    %cst_54 = arith.constant dense<0.000000e+00> : vector<2x16xf32>
    %140 = vector.multi_reduction <add>, %139, %cst_54 [1] : vector<2x8x16xf32> to vector<2x16xf32>
    %141 = vector.shape_cast %140 : vector<2x16xf32> to vector<2x1x16xf32>
    %cst_55 = arith.constant 8.000000e+00 : f32
    %142 = vector.broadcast %cst_55 : f32 to vector<2x1x16xf32>
    %143 = arith.divf %141, %142 : vector<2x1x16xf32>
    %cst_56 = arith.constant 9.99999974E-6 : f32
    %144 = vector.broadcast %cst_56 : f32 to vector<2x1x16xf32>
    %145 = arith.addf %143, %144 : vector<2x1x16xf32>
    %146 = math.rsqrt %145 : vector<2x1x16xf32>
    %147 = vector.broadcast %146 : vector<2x1x16xf32> to vector<2x8x16xf32>
    %148 = arith.mulf %138, %147 : vector<2x8x16xf32>
    %149 = vector.shape_cast %148 : vector<2x8x16xf32> to vector<16x16xf32>
    %150 = vector.broadcast %85 : vector<16x1xf32> to vector<16x16xf32>
    %151 = arith.mulf %149, %150 : vector<16x16xf32>
    %152 = vector.broadcast %86 : vector<16x1xf32> to vector<16x16xf32>
    %153 = arith.addf %151, %152 : vector<16x16xf32>
    %cst_57 = arith.constant dense<0.000000e+00> : vector<8x16xf32>
    %154 = tpu.matmul %93, %153, %cst_57 {dimension_numbers = #tpu.dot_dimension_numbers<[1], [0], [0], [1], [0, 0, 1, 1], [], []>} : vector<8x16xf32>, vector<16x16xf32>, vector<8x16xf32> -> vector<8x16xf32>
    %155 = vector.broadcast %87 : vector<8x1xf32> to vector<8x16xf32>
    %156 = arith.addf %154, %155 : vector<8x16xf32>
    %cst_58 = arith.constant 5.000000e-01 : f32
    %157 = vector.broadcast %cst_58 : f32 to vector<8x16xf32>
    %158 = arith.mulf %157, %156 : vector<8x16xf32>
    %cst_59 = arith.constant 0.707106769 : f32
    %159 = vector.broadcast %cst_59 : f32 to vector<8x16xf32>
    %160 = arith.mulf %156, %159 : vector<8x16xf32>
    %161 = math.erf %160 : vector<8x16xf32>
    %cst_60 = arith.constant 1.000000e+00 : f32
    %162 = vector.broadcast %cst_60 : f32 to vector<8x16xf32>
    %163 = arith.addf %162, %161 : vector<8x16xf32>
    %164 = arith.mulf %158, %163 : vector<8x16xf32>
    %cst_61 = arith.constant dense<0.000000e+00> : vector<16x16xf32>
    %165 = tpu.matmul %94, %164, %cst_61 {dimension_numbers = #tpu.dot_dimension_numbers<[1], [0], [0], [1], [0, 0, 1, 1], [], []>} : vector<16x8xf32>, vector<8x16xf32>, vector<16x16xf32> -> vector<16x16xf32>
    %166 = arith.addf %131, %165 : vector<16x16xf32>
    %167 = vector.broadcast %88 : vector<16x1xf32> to vector<16x16xf32>
    %168 = arith.addf %166, %167 : vector<16x16xf32>
    %c0_62 = arith.constant 0 : index
    %c8 = arith.constant 8 : index
    %169 = vector.load %arg3[%c0_62, %c8] : memref<16x10xf32, #tpu.memory_space<vmem>>, vector<16x1xf32>
    %c0_63 = arith.constant 0 : index
    %c9 = arith.constant 9 : index
    %170 = vector.load %arg3[%c0_63, %c9] : memref<16x10xf32, #tpu.memory_space<vmem>>, vector<16x1xf32>
    %171 = vector.shape_cast %168 : vector<16x16xf32> to vector<2x8x16xf32>
    %cst_64 = arith.constant dense<0.000000e+00> : vector<2x16xf32>
    %172 = vector.multi_reduction <add>, %171, %cst_64 [1] : vector<2x8x16xf32> to vector<2x16xf32>
    %173 = vector.shape_cast %172 : vector<2x16xf32> to vector<2x1x16xf32>
    %cst_65 = arith.constant 8.000000e+00 : f32
    %174 = vector.broadcast %cst_65 : f32 to vector<2x1x16xf32>
    %175 = arith.divf %173, %174 : vector<2x1x16xf32>
    %176 = vector.broadcast %175 : vector<2x1x16xf32> to vector<2x8x16xf32>
    %177 = arith.subf %171, %176 : vector<2x8x16xf32>
    %178 = arith.mulf %177, %177 : vector<2x8x16xf32>
    %cst_66 = arith.constant dense<0.000000e+00> : vector<2x16xf32>
    %179 = vector.multi_reduction <add>, %178, %cst_66 [1] : vector<2x8x16xf32> to vector<2x16xf32>
    %180 = vector.shape_cast %179 : vector<2x16xf32> to vector<2x1x16xf32>
    %cst_67 = arith.constant 8.000000e+00 : f32
    %181 = vector.broadcast %cst_67 : f32 to vector<2x1x16xf32>
    %182 = arith.divf %180, %181 : vector<2x1x16xf32>
    %cst_68 = arith.constant 9.99999974E-6 : f32
    %183 = vector.broadcast %cst_68 : f32 to vector<2x1x16xf32>
    %184 = arith.addf %182, %183 : vector<2x1x16xf32>
    %185 = math.rsqrt %184 : vector<2x1x16xf32>
    %186 = vector.broadcast %185 : vector<2x1x16xf32> to vector<2x8x16xf32>
    %187 = arith.mulf %177, %186 : vector<2x8x16xf32>
    %188 = vector.shape_cast %187 : vector<2x8x16xf32> to vector<16x16xf32>
    %189 = vector.broadcast %169 : vector<16x1xf32> to vector<16x16xf32>
    %190 = arith.mulf %188, %189 : vector<16x16xf32>
    %191 = vector.broadcast %170 : vector<16x1xf32> to vector<16x16xf32>
    %192 = arith.addf %190, %191 : vector<16x16xf32>
    %c240 = arith.constant 240 : index
    %c0_69 = arith.constant 0 : index
    %193 = vector.load %arg2[%c240, %c0_69] : memref<264x64xf32, #tpu.memory_space<vmem>>, vector<16x8xf32>
    %c256 = arith.constant 256 : index
    %c0_70 = arith.constant 0 : index
    %194 = vector.load %arg2[%c256, %c0_70] : memref<264x64xf32, #tpu.memory_space<vmem>>, vector<1x8xf32>
    %cst_71 = arith.constant dense<0.000000e+00> : vector<16x8xf32>
    %195 = tpu.matmul %192, %193, %cst_71 {dimension_numbers = #tpu.dot_dimension_numbers<[1], [0], [0], [1], [0, 0, 1, 1], [], []>} : vector<16x16xf32>, vector<16x8xf32>, vector<16x8xf32> -> vector<16x8xf32>
    %196 = vector.broadcast %194 : vector<1x8xf32> to vector<16x8xf32>
    %197 = arith.addf %195, %196 : vector<16x8xf32>
    %c0_72 = arith.constant 0 : index
    %c0_73 = arith.constant 0 : index
    %198 = vector.load %arg4[%c0_72, %c0_73] : memref<16x8xf32, #tpu.memory_space<vmem>>, vector<16x8xf32>
    tpu.vector_store %arg4[%c0_72, %c0_73], %197 {strides = array<i32>} : memref<16x8xf32, #tpu.memory_space<vmem>>, vector<16x8xf32>,
    return
  }
  func.func @transform_0(%arg0: i32) -> (i32, i32) {
    %c0_i32 = arith.constant 0 : i32
    %c0_i32_0 = arith.constant 0 : i32
    %c0_i32_1 = arith.constant 0 : i32
    return %c0_i32, %c0_i32_0 : i32, i32
  }
  func.func @transform_1(%arg0: i32) -> (i32, i32) {
    %c0_i32 = arith.constant 0 : i32
    %c0_i32_0 = arith.constant 0 : i32
    %c0_i32_1 = arith.constant 0 : i32
    return %c0_i32, %c0_i32_0 : i32, i32
  }
  func.func @transform_2(%arg0: i32) -> (i32, i32) {
    %c0_i32 = arith.constant 0 : i32
    %c0_i32_0 = arith.constant 0 : i32
    %c0_i32_1 = arith.constant 0 : i32
    return %c0_i32, %c0_i32_0 : i32, i32
  }
  func.func @transform_3(%arg0: i32) -> (i32, i32) {
    %c0_i32 = arith.constant 0 : i32
    %c0_i32_0 = arith.constant 0 : i32
    %c0_i32_1 = arith.constant 0 : i32
    return %c0_i32, %c0_i32_0 : i32, i32
  }
}

</mosaic_0001>

<bundles_post_ra>
// kernel: _lambda_.1
= control target key start
LH: loop header
LB: loop body
LE: loop exit
PB: predicated region body
PF: predicated region fallthrough
CT: control target
= control target key end

     0   :  { %v1397_v0 = vmov 1   ;;  %v1398_v1 = vmov 0   ;;  %vm33_vm0 = vcmask 130048   ;;  %vm198_vm1 = vcmask 523264   ;;  %s1679_s2 = inlined_call_operand.vmem [shape: f32[16,10], index: 2, kind: input, shape index: {}]   ;;  %s1680_s1 = inlined_call_operand.vmem [shape: f32[264,64], index: 1, kind: input, shape index: {}]   ;;  %s1681_s0 = inlined_call_operand.vmem [shape: f32[16,16], index: 0, kind: input, shape index: {}]   ;;  %s1682_s3 = inlined_call_operand.vmem [shape: f32[16,8], index: 3, kind: output, shape index: {}]  }
   0x1   :  { %1352 = vset.pattern.permute.xlu1 %v1397_v0  ;;  %1351 = vset.pattern.permute.xlu0 %v1398_v1  ;;  %v1433_v2 = vld [vmem:[%s1679_s2] sm:$0xff]  ;;  %v1440_v3 = vld [vmem:[%s1679_s2 + $0x8] sm:$0xff]  ;;  %v21_v59 = vld [vmem:[%s1680_s1 + $0x18] sm:$0xff]  ;;  %vm1400_vm2 = vmmov 0   ;;  %vm410_vm3 = vcmask 64512  }
   0x2   :  { %90 = vperm.xlu1 %1352, %v1433_v2   ;;  %79 = vperm.xlu0 %1351, %v1433_v2   ;;  %v18_v4 = vld [vmem:[%s1680_s1] sm:$0xff]  ;;  %v19_v5 = vld [vmem:[%s1680_s1 + $0x8] sm:$0xff]  ;;  %v24_v63 = vld [vmem:[%s1680_s1 + $0x30] sm:$0xff] }
   0x3   :  { %v1288_v6 = vpack.c.bf16 %v19_v5, %v18_v4  ;;  %v1453_v7 = vld [vmem:[%s1681_s0] sm:$0xff]  ;;  %v1460_v9 = vld [vmem:[%s1681_s0 + $0x8] sm:$0xff]  ;;  %v25_v1 = vld [vmem:[%s1680_s1 + $0x38] sm:$0xff] }
   0x4   :  { %v34_v8 = vsel %vm33_vm0, %v1453_v7, 0.0  ;;  %v41_v11 = vsel %vm33_vm0, %v1460_v9, 0.0  ;;  %v22_v60 = vld [vmem:[%s1680_s1 + $0x20] sm:$0xff]  ;;  %v23_v62 = vld [vmem:[%s1680_s1 + $0x28] sm:$0xff] }
   0x5   :  { %1289 = vmatprep.subr.bf16.mxu0 %v1288_v6  ;;  %v35_v10 = vrot.slane %v34_v8, 4  ;;  %v42_v13 = vrot.slane %v41_v11, 4  ;;  %v1292_v61 = vpack.c.bf16 %v22_v60, %v21_v59  ;;  %v1296_v0 = vpack.c.bf16 %v24_v63, %v23_v62  ;;  %v26_v4 = vld [vmem:[%s1680_s1 + $0x40] sm:$0xff] }
   0x6   :  { %94 = vperm.xlu1 %1352, %v1440_v3   ;;  %84 = vperm.xlu0 %1351, %v1440_v3   ;;  %v1300_v5 = vpack.c.bf16 %v26_v4, %v25_v1 }
   0x7   :  { %1291 = vmatpush3.bf16.msra.mxu0 %v1288_v6  ;;  %v36_v12 = vadd.f32 %v35_v10, %v34_v8  ;;  %v43_v15 = vadd.f32 %v42_v13, %v41_v11  ;;  %1293 = vmatprep.subr.bf16.mxu1 %v1292_v61  ;;  %v27_v6 = vld [vmem:[%s1680_s1 + $0x48] sm:$0xff]  ;;  %v28_v8 = vld [vmem:[%s1680_s1 + $0x50] sm:$0xff] }
   0x8   :  { %1295 = vmatpush3.bf16.msra.mxu1 %v1292_v61  ;;  %v1304_v10 = vpack.c.bf16 %v28_v8, %v27_v6  ;;  %v1140_v11 = vld [vmem:[%s1680_s1 + $0x10] ss:$0 sm:$0xff] }
   0x9   :  { %v37_v14 = vrot.slane %v36_v12, 2  ;;  %v44_v17 = vrot.slane %v43_v15, 2  ;;  %1297 = vmatprep.subr.bf16.mxu1 %v1296_v0 }
   0xb   :  { %v38_v16 = vadd.f32 %v37_v14, %v36_v12  ;;  %v45_v19 = vadd.f32 %v44_v17, %v43_v15 }
   0xc   :  { %1299 = vmatpush3.bf16.msra.mxu1 %v1296_v0 }
   0xd   :  { %v39_v18 = vrot.slane %v38_v16, 1  ;;  %v46_v21 = vrot.slane %v45_v19, 1  ;;  %1301 = vmatprep.subr.bf16.mxu1 %v1300_v5 }
   0xf   :  { %v40_v20 = vadd.f32 %v39_v18, %v38_v16  ;;  %v47_v23 = vadd.f32 %v46_v21, %v45_v19 }
  0x10   :  { %1303 = vmatpush3.bf16.msra.mxu1 %v1300_v5 }
  0x11   :  { %v49_v22 = vmul.f32 0.125, %v40_v20  ;;  %v50_v25 = vmul.f32 0.125, %v47_v23  ;;  %1305 = vmatprep.subr.bf16.mxu1 %v1304_v10 }
  0x13   :  { %v51_v24 = vsub.f32 %v1453_v7, %v49_v22  ;;  %v52_v27 = vsub.f32 %v1460_v9, %v50_v25 }
  0x14   :  { %1307 = vmatpush3.bf16.msra.mxu1 %v1304_v10 }
  0x15   :  { %v53_v26 = vmul.f32 %v51_v24, %v51_v24  ;;  %v54_v29 = vmul.f32 %v52_v27, %v52_v27 }
  0x17   :  { %v55_v28 = vsel %vm33_vm0, %v53_v26, 0.0  ;;  %v62_v31 = vsel %vm33_vm0, %v54_v29, 0.0  ;;  %v1399_v26 = vmov 0.0|0.0   ;;  %v1143_v29 = vld [vmem:[%s1680_s1 + $0x58] ss:$0 sm:$0xff] }
  0x18   :  { %v56_v30 = vrot.slane %v55_v28, 4  ;;  %v63_v33 = vrot.slane %v62_v31, 4  ;;  %1308 = vmatprep.subr.bf16.mxu0 %v1399_v26  ;;  %1331 = vmatprep.subr.bf16.mxu1 %v1399_v26  ;;  %v31_v26 = vld [vmem:[%s1680_s1 + $0x68] sm:$0xff] }
  0x1a   :  { %v57_v32 = vadd.f32 %v56_v30, %v55_v28  ;;  %v64_v35 = vadd.f32 %v63_v33, %v62_v31  ;;  %v1402_v28 = vmov 2  }
  0x1b   :  { %1353 = vset.pattern.permute.xlu0 %v1402_v28 }
  0x1c   :  { %v58_v34 = vrot.slane %v57_v32, 2  ;;  %v65_v37 = vrot.slane %v64_v35, 2  ;;  %329 = vperm.xlu0 %1353, %v1433_v2  }
  0x1e   :  { %v59_v36 = vadd.f32 %v58_v34, %v57_v32  ;;  %v66_v39 = vadd.f32 %v65_v37, %v64_v35 }
  0x20   :  { %v60_v38 = vrot.slane %v59_v36, 1  ;;  %v67_v41 = vrot.slane %v66_v39, 1 }
  0x22   :  { %v61_v40 = vadd.f32 %v60_v38, %v59_v36  ;;  %v68_v43 = vadd.f32 %v67_v41, %v66_v39 }
  0x24   :  { %v69_v42 = vmul.f32 0.125, %v61_v40  ;;  %v70_v45 = vmul.f32 0.125, %v68_v43 }
  0x26   :  { %v71_v44 = vadd.f32 1e-05, %v69_v42  ;;  %v72_v46 = vadd.f32 1e-05, %v70_v45 }
  0x28   :  { %1365 = vrsqrt.f32 %v71_v44 }
  0x29   :  { %1367 = vrsqrt.f32 %v72_v46 }
  0x32   :  { %v1366_v47 = vpop.eup %1365 }
  0x33   :  { %v75_v48 = vmul.f32 %v1366_v47, %v51_v24  ;;  %v1368_v49 = vpop.eup %1367 }
  0x34   :  { %v76_v53 = vmul.f32 %v1368_v49, %v52_v27  ;;  %v1401_v27 = vmov 0.0  }
  0x81   :  { %v1468_v50 = vpop.permute.xlu1 %90  ;;  %v1470_v51 = vpop.permute.xlu0 %79 }
  0x82   :  { %v87_v52 = vmul.f32 %v1470_v51, %v75_v48 }
  0x84   :  { %v97_v54 = vadd.f32 %v1468_v50, %v87_v52 }
  0x85   :  { %v1474_v55 = vpop.permute.xlu0 %84  ;;  %v1478_v57 = vpop.permute.xlu1 %94 }
  0x86   :  { %v88_v56 = vmul.f32 %v1474_v55, %v76_v53  ;;  %1209 = vmatprep.mubr.msk.f32.mxu0 %vm33_vm0, %v97_v54 }
  0x88   :  { %v98_v58 = vadd.f32 %v1478_v57, %v88_v56 }
  0x8a   :  { %1210 = vmatmul.mubr.msk.f32.vlgmr.msra.gmra.mrb[0].mxu0 %vm33_vm0, %v98_v58 }
  0x8b   :  { %1235 = vmatprep.mubr.msk.f32.mxu0 %vm1400_vm2, %v1401_v27 }
 0x15d   :  { %v1211_v12 = vpop.f32.mrb[0].mxu0 }
 0x15e   :  { %v181_v13 = vadd.f32 %v1211_v12, %v1140_v11  ;;  %v175_v14 = vpop.f32.mrb[1].mxu0 }
 0x15f   :  { %v176_v15 = vadd.f32 %v1140_v11, %v175_v14 }
 0x160   :  { %v187_v16 = vmul.f32 0.70710677, %v181_v13  ;;  %v185_v23 = vmul.f32 0.5, %v181_v13 }
 0x161   :  { %v186_v17 = vmul.f32 0.70710677, %v176_v15  ;;  %v184_v21 = vmul.f32 0.5, %v176_v15 }
 0x162   :  { %1369 = verf.f32 %v187_v16 }
 0x163   :  { %1371 = verf.f32 %v186_v17 }
 0x16c   :  { %v1370_v18 = vpop.eup %1369 }
 0x16d   :  { %v1372_v19 = vpop.eup %1371  ;;  %v191_v20 = vadd.f32 1.0, %v1370_v18 }
 0x16e   :  { %v190_v22 = vadd.f32 1.0, %v1372_v19 }
 0x16f   :  { %v193_v25 = vmul.f32 %v191_v20, %v185_v23 }
 0x170   :  { %v192_v24 = vmul.f32 %v190_v22, %v184_v21 }
 0x172   :  { %1228 = vmatprep.mubr.msk.f32.mxu1 %vm198_vm1, %v192_v24 }
 0x173   :  { %1229 = vmatmul.mubr.msk.f32.vlgmr.msra.gmra.mrb[0].mxu1 %vm198_vm1, %v193_v25  ;;  %v30_v25 = vld [vmem:[%s1680_s1 + $0x60] sm:$0xff] }
 0x174   :  { %1273 = vmatprep.mubr.msk.f32.mxu1 %vm1400_vm2, %v1401_v27 }
 0x246   :  { %v1230_v30 = vpop.f32.mrb[0].mxu1 }
 0x247   :  { %v277_v31 = vadd.f32 %v1230_v30, %v1143_v29  ;;  %v271_v32 = vpop.f32.mrb[1].mxu1 }
 0x248   :  { %v272_v33 = vadd.f32 %v1143_v29, %v271_v32 }
 0x249   :  { %v1516_v34 = vadd.f32 %v277_v31, %v1460_v9 }
 0x24a   :  { %v1519_v35 = vadd.f32 %v272_v33, %v1453_v7 }
 0x24b   :  { %v289_v36 = vsel %vm33_vm0, %v1516_v34, 0.0 }
 0x24c   :  { %v290_v37 = vrot.slane %v289_v36, 4  ;;  %v282_v38 = vsel %vm33_vm0, %v1519_v35, 0.0 }
 0x24d   :  { %v283_v39 = vrot.slane %v282_v38, 4 }
 0x24e   :  { %v291_v40 = vadd.f32 %v290_v37, %v289_v36  ;;  %v32_v37 = vld [vmem:[%s1680_s1 + $0x70] sm:$0xff] }
 0x24f   :  { %v284_v41 = vadd.f32 %v283_v39, %v282_v38  ;;  %v504_v38 = vld [vmem:[%s1680_s1 + $0x78] sm:$0xff]  ;;  %v505_v39 = vld [vmem:[%s1680_s1 + $0x80] sm:$0xff] }
 0x250   :  { %v292_v42 = vrot.slane %v291_v40, 2 }
 0x251   :  { %v285_v43 = vrot.slane %v284_v41, 2 }
 0x252   :  { %v293_v44 = vadd.f32 %v292_v42, %v291_v40  ;;  %v1311_v40 = vpack.c.bf16 %v505_v39, %v504_v38  ;;  %v508_v38 = vld [vmem:[%s1680_s1 + $0x98] sm:$0xff] }
 0x253   :  { %v286_v45 = vadd.f32 %v285_v43, %v284_v41 }
 0x254   :  { %v294_v46 = vrot.slane %v293_v44, 1 }
 0x255   :  { %v287_v9 = vrot.slane %v286_v45, 1 }
 0x256   :  { %v295_v47 = vadd.f32 %v294_v46, %v293_v44 }
 0x257   :  { %v288_v48 = vadd.f32 %v287_v9, %v286_v45 }
 0x258   :  { %v297_v7 = vmul.f32 0.125, %v295_v47 }
 0x259   :  { %v296_v49 = vmul.f32 0.125, %v288_v48 }
 0x25a   :  { %v299_v52 = vsub.f32 %v1516_v34, %v297_v7 }
 0x25b   :  { %v298_v53 = vsub.f32 %v1519_v35, %v296_v49 }
 0x25c   :  { %v301_v54 = vmul.f32 %v299_v52, %v299_v52 }
 0x25d   :  { %v300_v56 = vmul.f32 %v298_v53, %v298_v53 }
 0x25e   :  { %v309_v58 = vsel %vm33_vm0, %v301_v54, 0.0 }
 0x25f   :  { %v310_v59 = vrot.slane %v309_v58, 4  ;;  %v302_v60 = vsel %vm33_vm0, %v300_v56, 0.0 }
 0x260   :  { %v303_v61 = vrot.slane %v302_v60, 4 }
 0x261   :  { %v311_v62 = vadd.f32 %v310_v59, %v309_v58 }
 0x262   :  { %v304_v63 = vadd.f32 %v303_v61, %v302_v60 }
 0x263   :  { %v312_v0 = vrot.slane %v311_v62, 2 }
 0x264   :  { %v305_v1 = vrot.slane %v304_v63, 2 }
 0x265   :  { %v313_v4 = vadd.f32 %v312_v0, %v311_v62 }
 0x266   :  { %v306_v5 = vadd.f32 %v305_v1, %v304_v63 }
 0x267   :  { %v314_v6 = vrot.slane %v313_v4, 1 }
 0x268   :  { %v307_v8 = vrot.slane %v306_v5, 1 }
 0x269   :  { %v315_v10 = vadd.f32 %v314_v6, %v313_v4 }
 0x26a   :  { %v308_v11 = vadd.f32 %v307_v8, %v306_v5 }
 0x26b   :  { %v317_v12 = vmul.f32 0.125, %v315_v10 }
 0x26c   :  { %v316_v13 = vmul.f32 0.125, %v308_v11 }
 0x26d   :  { %v319_v14 = vadd.f32 1e-05, %v317_v12 }
 0x26e   :  { %v318_v15 = vadd.f32 1e-05, %v316_v13 }
 0x26f   :  { %1373 = vrsqrt.f32 %v319_v14 }
 0x270   :  { %1375 = vrsqrt.f32 %v318_v15 }
 0x279   :  { %v1374_v16 = vpop.eup %1373 }
 0x27a   :  { %v1376_v17 = vpop.eup %1375  ;;  %v323_v18 = vmul.f32 %v1374_v16, %v299_v52 }
 0x27b   :  { %v322_v19 = vmul.f32 %v1376_v17, %v298_v53 }
 0x27c   :  { %v325_v20 = vmul.f32 %v323_v18, %v1474_v55  ;;  %v1404_v55 = vmov 4  }
 0x27d   :  { %v324_v21 = vmul.f32 %v322_v19, %v1470_v51  ;;  %v1403_v51 = vmov 3   ;;  %1355 = vset.pattern.permute.xlu0 %v1404_v55 }
 0x27e   :  { %v327_v22 = vadd.f32 %v325_v20, %v1478_v57  ;;  %1354 = vset.pattern.permute.xlu1 %v1403_v51  ;;  %562 = vperm.xlu0 %1355, %v1433_v2   ;;  %v330_v57 = vpop.permute.xlu0 %329 }
 0x27f   :  { %v326_v23 = vadd.f32 %v324_v21, %v1468_v50  ;;  %495 = vperm.xlu1 %1354, %v1433_v2   ;;  %v1405_v50 = vmov 5  }
 0x281   :  { %v1309_v24 = vpack.c.bf16 %v327_v22, %v326_v23 }
 0x282   :  { %1358 = vset.pattern.permute.xlu0 %v1405_v50 }
 0x283   :  { %1310 = vmatpush3.bf16.msra.mxu0 %v1309_v24  ;;  %499 = vperm.xlu1 %1354, %v1440_v3  }
 0x284   :  { %576 = vperm.xlu0 %1358, %v1440_v3  }
 0x286   :  { %1236 = vmatmul.mubr.msk.f32.vlgmr.msra.gmra.mrb[2].mxu0 %vm33_vm0, %v30_v25 }
 0x287   :  { %1240 = vmatprep.mubr.msk.f32.mxu0 %vm410_vm3, %v31_v26  ;;  %1356 = vset.pattern.permute.xlu1 %v1404_v55 }
 0x288   :  { %566 = vperm.xlu1 %1356, %v1440_v3  }
 0x28c   :  { %1357 = vset.pattern.permute.xlu1 %v1405_v50 }
 0x28d   :  { %572 = vperm.xlu1 %1357, %v1433_v2  }
 0x2fd   :  { %v1573_v55 = vpop.permute.xlu0 %562 }
 0x2fe   :  { %v496_v41 = vpop.permute.xlu1 %495 }
 0x302   :  { %v500_v45 = vpop.permute.xlu1 %499 }
 0x307   :  { %v1571_v51 = vpop.permute.xlu1 %566 }
 0x359   :  { %v401_v27 = vpop.f32.mrb[2].mxu0 }
 0x35a   :  { %v402_v28 = vadd.f32 %v401_v27, %v330_v57  ;;  %v1237_v29 = vpop.f32.mrb[3].mxu0 }
 0x35c   :  { %v406_v30 = vmul.f32 0.70710677, %v402_v28  ;;  %v405_v32 = vmul.f32 0.5, %v402_v28 }
 0x35e   :  { %1377 = verf.f32 %v406_v30  ;;  %v1576_v30 = vpop.permute.xlu1 %572 }
 0x368   :  { %v1378_v31 = vpop.eup %1377 }
 0x369   :  { %v408_v33 = vadd.f32 1.0, %v1378_v31 }
 0x36b   :  { %v409_v36 = vmul.f32 %v408_v33, %v405_v32  ;;  %v1579_v32 = vpop.permute.xlu0 %576 }
 0x36d   :  { %1238 = vmatprep.subr.mxu0 %v409_v36 }
 0x36e   :  { %1239 = vmatpush3.msra.mxu0 %v409_v36 }
 0x36f   :  { %1241 = vmatmul.mubr.msk.f32.vlgmr.msra.gmra.mrb[4].mxu0 %vm410_vm3, %v32_v37  ;;  %1312 = vmatprep.subr.bf16.mxu0 %v1311_v40  ;;  %v507_v37 = vld [vmem:[%s1680_s1 + $0x90] sm:$0xff] }
 0x370   :  { %1314 = vmatpush3.bf16.msra.mxu0 %v1311_v40  ;;  %v1315_v39 = vpack.c.bf16 %v508_v38, %v507_v37  ;;  %v509_v40 = vld [vmem:[%s1680_s1 + $0xa0] sm:$0xff] }
 0x372   :  { %1316 = vmatprep.subr.bf16.mxu0 %v1315_v39 }
 0x442   :  { %v1242_v42 = vpop.f32.mrb[4].mxu0 }
 0x443   :  { %v493_v43 = vadd.f32 %v1242_v42, %v1516_v34  ;;  %v483_v44 = vpop.f32.mrb[5].mxu0 }
 0x444   :  { %v492_v46 = vadd.f32 %v483_v44, %v1519_v35  ;;  %v512_v44 = vld [vmem:[%s1680_s1 + $0xb8] sm:$0xff] }
 0x445   :  { %v1559_v9 = vadd.f32 %v500_v45, %v493_v43  ;;  %v511_v43 = vld [vmem:[%s1680_s1 + $0xb0] sm:$0xff] }
 0x446   :  { %v1561_v47 = vadd.f32 %v496_v41, %v492_v46  ;;  %v510_v41 = vld [vmem:[%s1680_s1 + $0xa8] sm:$0xff]  ;;  %v1323_v45 = vpack.c.bf16 %v512_v44, %v511_v43  ;;  %v513_v46 = vld [vmem:[%s1680_s1 + $0xc0] sm:$0xff] }
 0x447   :  { %v526_v48 = vsel %vm33_vm0, %v1559_v9, 0.0  ;;  %v1319_v42 = vpack.c.bf16 %v510_v41, %v509_v40 }
 0x448   :  { %v527_v7 = vrot.slane %v526_v48, 4  ;;  %v519_v49 = vsel %vm33_vm0, %v1561_v47, 0.0 }
 0x449   :  { %v520_v52 = vrot.slane %v519_v49, 4 }
 0x44a   :  { %v528_v53 = vadd.f32 %v527_v7, %v526_v48  ;;  %v514_v48 = vld [vmem:[%s1680_s1 + $0xc8] sm:$0xff] }
 0x44b   :  { %v521_v54 = vadd.f32 %v520_v52, %v519_v49  ;;  %v1327_v7 = vpack.c.bf16 %v514_v48, %v513_v46  ;;  %v1149_v49 = vld [vmem:[%s1680_s1 + $0x88] ss:$0 sm:$0xff] }
 0x44c   :  { %v529_v56 = vrot.slane %v528_v53, 2 }
 0x44d   :  { %v522_v34 = vrot.slane %v521_v54, 2 }
 0x44e   :  { %v530_v58 = vadd.f32 %v529_v56, %v528_v53 }
 0x44f   :  { %v523_v59 = vadd.f32 %v522_v34, %v521_v54 }
 0x450   :  { %v531_v60 = vrot.slane %v530_v58, 1 }
 0x451   :  { %v524_v35 = vrot.slane %v523_v59, 1 }
 0x452   :  { %v532_v61 = vadd.f32 %v531_v60, %v530_v58 }
 0x453   :  { %v525_v62 = vadd.f32 %v524_v35, %v523_v59 }
 0x454   :  { %v534_v63 = vmul.f32 0.125, %v532_v61 }
 0x455   :  { %v533_v0 = vmul.f32 0.125, %v525_v62 }
 0x456   :  { %v536_v1 = vsub.f32 %v1559_v9, %v534_v63 }
 0x457   :  { %v535_v4 = vsub.f32 %v1561_v47, %v533_v0 }
 0x458   :  { %v538_v5 = vmul.f32 %v536_v1, %v536_v1 }
 0x459   :  { %v537_v6 = vmul.f32 %v535_v4, %v535_v4 }
 0x45a   :  { %v546_v8 = vsel %vm33_vm0, %v538_v5, 0.0  ;;  %v1152_v5 = vld [vmem:[%s1680_s1 + $0xd0] ss:$0 sm:$0xff] }
 0x45b   :  { %v547_v10 = vrot.slane %v546_v8, 4  ;;  %v539_v11 = vsel %vm33_vm0, %v537_v6, 0.0 }
 0x45c   :  { %v540_v12 = vrot.slane %v539_v11, 4 }
 0x45d   :  { %v548_v13 = vadd.f32 %v547_v10, %v546_v8 }
 0x45e   :  { %v541_v14 = vadd.f32 %v540_v12, %v539_v11 }
 0x45f   :  { %v549_v15 = vrot.slane %v548_v13, 2 }
 0x460   :  { %v542_v16 = vrot.slane %v541_v14, 2 }
 0x461   :  { %v550_v17 = vadd.f32 %v549_v15, %v548_v13 }
 0x462   :  { %v543_v18 = vadd.f32 %v542_v16, %v541_v14 }
 0x463   :  { %v551_v19 = vrot.slane %v550_v17, 1 }
 0x464   :  { %v544_v20 = vrot.slane %v543_v18, 1 }
 0x465   :  { %v552_v21 = vadd.f32 %v551_v19, %v550_v17 }
 0x466   :  { %v545_v22 = vadd.f32 %v544_v20, %v543_v18 }
 0x467   :  { %v554_v23 = vmul.f32 0.125, %v552_v21 }
 0x468   :  { %v553_v24 = vmul.f32 0.125, %v545_v22 }
 0x469   :  { %v556_v25 = vadd.f32 1e-05, %v554_v23 }
 0x46a   :  { %v555_v26 = vadd.f32 1e-05, %v553_v24 }
 0x46b   :  { %1379 = vrsqrt.f32 %v556_v25 }
 0x46c   :  { %1381 = vrsqrt.f32 %v555_v26 }
 0x475   :  { %v1380_v50 = vpop.eup %1379 }
 0x476   :  { %v1382_v57 = vpop.eup %1381  ;;  %v560_v27 = vmul.f32 %v1380_v50, %v536_v1 }
 0x477   :  { %v559_v28 = vmul.f32 %v1382_v57, %v535_v4  ;;  %v1406_v4 = vmov 6  }
 0x478   :  { %v570_v29 = vmul.f32 %v1571_v51, %v560_v27  ;;  %1359 = vset.pattern.permute.xlu1 %v1406_v4 }
 0x479   :  { %v569_v31 = vmul.f32 %v1573_v55, %v559_v28  ;;  %810 = vperm.xlu1 %1359, %v1433_v2  }
 0x47a   :  { %v580_v36 = vadd.f32 %v1579_v32, %v570_v29 }
 0x47b   :  { %v579_v33 = vadd.f32 %v1576_v30, %v569_v31 }
 0x47d   :  { %1247 = vmatprep.mubr.msk.f32.mxu0 %vm33_vm0, %v579_v33 }
 0x47e   :  { %1248 = vmatmul.mubr.msk.f32.vlgmr.msra.gmra.mrb[6].mxu0 %vm33_vm0, %v580_v36 }
 0x47f   :  { %1318 = vmatpush3.bf16.msra.mxu0 %v1315_v39 }
 0x480   :  { %1320 = vmatprep.subr.bf16.mxu0 %v1319_v42 }
 0x483   :  { %1322 = vmatpush3.bf16.msra.mxu0 %v1319_v42 }
 0x484   :  { %1324 = vmatprep.subr.bf16.mxu0 %v1323_v45 }
 0x487   :  { %1326 = vmatpush3.bf16.msra.mxu0 %v1323_v45 }
 0x488   :  { %1328 = vmatprep.subr.bf16.mxu0 %v1327_v7 }
 0x48b   :  { %1330 = vmatpush3.bf16.msra.mxu0 %v1327_v7 }
 0x551   :  { %v1249_v52 = vpop.f32.mrb[6].mxu0 }
 0x552   :  { %v663_v53 = vadd.f32 %v1249_v52, %v1149_v49  ;;  %v657_v54 = vpop.f32.mrb[7].mxu0 }
 0x553   :  { %v658_v56 = vadd.f32 %v1149_v49, %v657_v54 }
 0x554   :  { %v669_v34 = vmul.f32 0.70710677, %v663_v53  ;;  %v667_v63 = vmul.f32 0.5, %v663_v53 }
 0x555   :  { %v668_v58 = vmul.f32 0.70710677, %v658_v56  ;;  %v666_v61 = vmul.f32 0.5, %v658_v56 }
 0x556   :  { %1383 = verf.f32 %v669_v34 }
 0x557   :  { %1385 = verf.f32 %v668_v58 }
 0x560   :  { %v1384_v59 = vpop.eup %1383 }
 0x561   :  { %v1386_v60 = vpop.eup %1385  ;;  %v673_v35 = vadd.f32 1.0, %v1384_v59 }
 0x562   :  { %v672_v62 = vadd.f32 1.0, %v1386_v60 }
 0x563   :  { %v675_v1 = vmul.f32 %v673_v35, %v667_v63  ;;  %v516_v63 = vld [vmem:[%s1680_s1 + $0xd8] sm:$0xff] }
 0x564   :  { %v674_v0 = vmul.f32 %v672_v62, %v666_v61 }
 0x566   :  { %1266 = vmatprep.mubr.msk.f32.mxu0 %vm198_vm1, %v674_v0  ;;  %v517_v0 = vld [vmem:[%s1680_s1 + $0xe0] sm:$0xff] }
 0x567   :  { %1267 = vmatmul.mubr.msk.f32.vlgmr.msra.gmra.mrb[8].mxu0 %vm198_vm1, %v675_v1 }
 0x63a   :  { %v1268_v6 = vpop.f32.mrb[8].mxu0 }
 0x63b   :  { %v758_v8 = vadd.f32 %v1268_v6, %v1152_v5  ;;  %v752_v10 = vpop.f32.mrb[9].mxu0 }
 0x63c   :  { %v753_v11 = vadd.f32 %v1152_v5, %v752_v10 }
 0x63d   :  { %v1619_v12 = vadd.f32 %v758_v8, %v1559_v9 }
 0x63e   :  { %v1622_v13 = vadd.f32 %v753_v11, %v1561_v47 }
 0x63f   :  { %v770_v14 = vsel %vm33_vm0, %v1619_v12, 0.0 }
 0x640   :  { %v771_v15 = vrot.slane %v770_v14, 4  ;;  %v763_v16 = vsel %vm33_vm0, %v1622_v13, 0.0 }
 0x641   :  { %v764_v17 = vrot.slane %v763_v16, 4 }
 0x642   :  { %v772_v18 = vadd.f32 %v771_v15, %v770_v14  ;;  %v518_v15 = vld [vmem:[%s1680_s1 + $0xe8] sm:$0xff] }
 0x643   :  { %v765_v19 = vadd.f32 %v764_v17, %v763_v16 }
 0x644   :  { %v773_v20 = vrot.slane %v772_v18, 2 }
 0x645   :  { %v766_v21 = vrot.slane %v765_v19, 2 }
 0x646   :  { %v774_v22 = vadd.f32 %v773_v20, %v772_v18 }
 0x647   :  { %v767_v23 = vadd.f32 %v766_v21, %v765_v19 }
 0x648   :  { %v775_v24 = vrot.slane %v774_v22, 1 }
 0x649   :  { %v768_v9 = vrot.slane %v767_v23, 1 }
 0x64a   :  { %v776_v25 = vadd.f32 %v775_v24, %v774_v22 }
 0x64b   :  { %v769_v26 = vadd.f32 %v768_v9, %v767_v23 }
 0x64c   :  { %v778_v47 = vmul.f32 0.125, %v776_v25 }
 0x64d   :  { %v777_v50 = vmul.f32 0.125, %v769_v26 }
 0x64e   :  { %v780_v57 = vsub.f32 %v1619_v12, %v778_v47 }
 0x64f   :  { %v779_v27 = vsub.f32 %v1622_v13, %v777_v50 }
 0x650   :  { %v782_v28 = vmul.f32 %v780_v57, %v780_v57 }
 0x651   :  { %v781_v29 = vmul.f32 %v779_v27, %v779_v27 }
 0x652   :  { %v790_v31 = vsel %vm33_vm0, %v782_v28, 0.0 }
 0x653   :  { %v791_v33 = vrot.slane %v790_v31, 4  ;;  %v783_v36 = vsel %vm33_vm0, %v781_v29, 0.0 }
 0x654   :  { %v784_v37 = vrot.slane %v783_v36, 4 }
 0x655   :  { %v792_v38 = vadd.f32 %v791_v33, %v790_v31 }
 0x656   :  { %v785_v39 = vadd.f32 %v784_v37, %v783_v36 }
 0x657   :  { %v793_v40 = vrot.slane %v792_v38, 2 }
 0x658   :  { %v786_v41 = vrot.slane %v785_v39, 2 }
 0x659   :  { %v794_v42 = vadd.f32 %v793_v40, %v792_v38 }
 0x65a   :  { %v787_v43 = vadd.f32 %v786_v41, %v785_v39 }
 0x65b   :  { %v795_v44 = vrot.slane %v794_v42, 1 }
 0x65c   :  { %v788_v45 = vrot.slane %v787_v43, 1 }
 0x65d   :  { %v796_v46 = vadd.f32 %v795_v44, %v794_v42 }
 0x65e   :  { %v789_v48 = vadd.f32 %v788_v45, %v787_v43 }
 0x65f   :  { %v798_v7 = vmul.f32 0.125, %v796_v46 }
 0x660   :  { %v797_v49 = vmul.f32 0.125, %v789_v48 }
 0x661   :  { %v800_v52 = vadd.f32 1e-05, %v798_v7 }
 0x662   :  { %v799_v53 = vadd.f32 1e-05, %v797_v49 }
 0x663   :  { %1387 = vrsqrt.f32 %v800_v52 }
 0x664   :  { %1389 = vrsqrt.f32 %v799_v53 }
 0x66d   :  { %v1388_v54 = vpop.eup %1387 }
 0x66e   :  { %v1390_v56 = vpop.eup %1389  ;;  %v804_v34 = vmul.f32 %v1388_v54, %v780_v57 }
 0x66f   :  { %v803_v58 = vmul.f32 %v1390_v56, %v779_v27 }
 0x670   :  { %v806_v59 = vmul.f32 %v804_v34, %v1571_v51  ;;  %v1407_v51 = vmov 7  }
 0x671   :  { %v805_v60 = vmul.f32 %v803_v58, %v1573_v55  ;;  %1361 = vset.pattern.permute.xlu0 %v1407_v51  ;;  %1360 = vset.pattern.permute.xlu1 %v1407_v51  ;;  %v1408_v55 = vmov 8  }
 0x672   :  { %v808_v35 = vadd.f32 %v806_v59, %v1579_v32  ;;  %979 = vperm.xlu0 %1361, %v1440_v3   ;;  %975 = vperm.xlu1 %1360, %v1433_v2   ;;  %v811_v32 = vpop.permute.xlu1 %810 }
 0x673   :  { %v807_v61 = vadd.f32 %v805_v60, %v1576_v30  ;;  %v1409_v30 = vmov 9  }
 0x675   :  { %v1332_v62 = vpack.c.bf16 %v808_v35, %v807_v61 }
 0x676   :  { %1362 = vset.pattern.permute.xlu1 %v1408_v55  ;;  %1363 = vset.pattern.permute.xlu0 %v1409_v30 }
 0x677   :  { %1333 = vmatpush3.bf16.msra.mxu1 %v1332_v62  ;;  %1027 = vperm.xlu1 %1362, %v1433_v2  }
 0x678   :  { %1037 = vperm.xlu0 %1363, %v1433_v2   ;;  %v1046_v2 = vld [vmem:[%s1680_s1 + $0xf0] sm:$0xff] }
 0x67a   :  { %1274 = vmatmul.mubr.msk.f32.vlgmr.msra.gmra.mrb[2].mxu1 %vm33_vm0, %v516_v63 }
 0x67b   :  { %1278 = vmatprep.mubr.msk.f32.mxu1 %vm410_vm3, %v517_v0  ;;  %1031 = vperm.xlu1 %1362, %v1440_v3  }
 0x67f   :  { %1364 = vset.pattern.permute.xlu1 %v1409_v30 }
 0x680   :  { %1041 = vperm.xlu1 %1364, %v1440_v3   ;;  %v1047_v3 = vld [vmem:[%s1680_s1 + $0xf8] sm:$0xff] }
 0x681   :  { %v1334_v16 = vpack.c.bf16 %v1047_v3, %v1046_v2 }
 0x6f1   :  { %v980_v18 = vpop.permute.xlu0 %979  ;;  %v976_v21 = vpop.permute.xlu1 %975 }
 0x6f6   :  { %v1028_v63 = vpop.permute.xlu1 %1027 }
 0x6fa   :  { %v1032_v51 = vpop.permute.xlu1 %1031 }
 0x74d   :  { %v882_v1 = vpop.f32.mrb[2].mxu1 }
 0x74e   :  { %v883_v4 = vadd.f32 %v882_v1, %v811_v32  ;;  %v1275_v5 = vpop.f32.mrb[3].mxu1 }
 0x750   :  { %v887_v6 = vmul.f32 0.70710677, %v883_v4  ;;  %v886_v10 = vmul.f32 0.5, %v883_v4  ;;  %v1038_v4 = vpop.permute.xlu0 %1037 }
 0x752   :  { %1391 = verf.f32 %v887_v6  ;;  %v1042_v6 = vpop.permute.xlu1 %1041 }
 0x75c   :  { %v1392_v8 = vpop.eup %1391 }
 0x75d   :  { %v889_v11 = vadd.f32 1.0, %v1392_v8 }
 0x75f   :  { %v890_v14 = vmul.f32 %v889_v11, %v886_v10  ;;  %v1158_v11 = vld [vmem:[%s1680_s1 + $0x100] ss:$0 sm:$0xff] }
 0x761   :  { %1276 = vmatprep.subr.mxu1 %v890_v14 }
 0x762   :  { %1277 = vmatpush3.msra.mxu1 %v890_v14 }
 0x763   :  { %1279 = vmatmul.mubr.msk.f32.vlgmr.msra.gmra.mrb[4].mxu1 %vm410_vm3, %v518_v15  ;;  %1335 = vmatprep.subr.bf16.mxu1 %v1334_v16 }
 0x764   :  { %1337 = vmatpush3.bf16.msra.mxu1 %v1334_v16 }
 0x836   :  { %v1280_v17 = vpop.f32.mrb[4].mxu1 }
 0x837   :  { %v973_v19 = vadd.f32 %v1280_v17, %v1619_v12  ;;  %v963_v20 = vpop.f32.mrb[5].mxu1 }
 0x838   :  { %v972_v22 = vadd.f32 %v963_v20, %v1622_v13 }
 0x839   :  { %v983_v23 = vadd.f32 %v980_v18, %v973_v19 }
 0x83a   :  { %v982_v24 = vadd.f32 %v976_v21, %v972_v22 }
 0x83b   :  { %v991_v9 = vsel %vm33_vm0, %v983_v23, 0.0 }
 0x83c   :  { %v992_v25 = vrot.slane %v991_v9, 4  ;;  %v984_v26 = vsel %vm33_vm0, %v982_v24, 0.0 }
 0x83d   :  { %v985_v47 = vrot.slane %v984_v26, 4 }
 0x83e   :  { %v993_v50 = vadd.f32 %v992_v25, %v991_v9 }
 0x83f   :  { %v986_v57 = vadd.f32 %v985_v47, %v984_v26 }
 0x840   :  { %v994_v27 = vrot.slane %v993_v50, 2 }
 0x841   :  { %v987_v28 = vrot.slane %v986_v57, 2 }
 0x842   :  { %v995_v29 = vadd.f32 %v994_v27, %v993_v50 }
 0x843   :  { %v988_v31 = vadd.f32 %v987_v28, %v986_v57 }
 0x844   :  { %v996_v33 = vrot.slane %v995_v29, 1 }
 0x845   :  { %v989_v12 = vrot.slane %v988_v31, 1 }
 0x846   :  { %v997_v36 = vadd.f32 %v996_v33, %v995_v29 }
 0x847   :  { %v990_v37 = vadd.f32 %v989_v12, %v988_v31 }
 0x848   :  { %v999_v38 = vmul.f32 0.125, %v997_v36 }
 0x849   :  { %v998_v13 = vmul.f32 0.125, %v990_v37 }
 0x84a   :  { %v1001_v39 = vsub.f32 %v983_v23, %v999_v38 }
 0x84b   :  { %v1000_v40 = vsub.f32 %v982_v24, %v998_v13 }
 0x84c   :  { %v1003_v41 = vmul.f32 %v1001_v39, %v1001_v39 }
 0x84d   :  { %v1002_v42 = vmul.f32 %v1000_v40, %v1000_v40 }
 0x84e   :  { %v1011_v43 = vsel %vm33_vm0, %v1003_v41, 0.0 }
 0x84f   :  { %v1012_v44 = vrot.slane %v1011_v43, 4  ;;  %v1004_v45 = vsel %vm33_vm0, %v1002_v42, 0.0 }
 0x850   :  { %v1005_v46 = vrot.slane %v1004_v45, 4 }
 0x851   :  { %v1013_v48 = vadd.f32 %v1012_v44, %v1011_v43 }
 0x852   :  { %v1006_v7 = vadd.f32 %v1005_v46, %v1004_v45 }
 0x853   :  { %v1014_v49 = vrot.slane %v1013_v48, 2 }
 0x854   :  { %v1007_v52 = vrot.slane %v1006_v7, 2 }
 0x855   :  { %v1015_v53 = vadd.f32 %v1014_v49, %v1013_v48 }
 0x856   :  { %v1008_v54 = vadd.f32 %v1007_v52, %v1006_v7 }
 0x857   :  { %v1016_v56 = vrot.slane %v1015_v53, 1 }
 0x858   :  { %v1009_v34 = vrot.slane %v1008_v54, 1 }
 0x859   :  { %v1017_v58 = vadd.f32 %v1016_v56, %v1015_v53 }
 0x85a   :  { %v1010_v59 = vadd.f32 %v1009_v34, %v1008_v54 }
 0x85b   :  { %v1019_v60 = vmul.f32 0.125, %v1017_v58 }
 0x85c   :  { %v1018_v35 = vmul.f32 0.125, %v1010_v59 }
 0x85d   :  { %v1021_v61 = vadd.f32 1e-05, %v1019_v60 }
 0x85e   :  { %v1020_v62 = vadd.f32 1e-05, %v1018_v35 }
 0x85f   :  { %1393 = vrsqrt.f32 %v1021_v61 }
 0x860   :  { %1395 = vrsqrt.f32 %v1020_v62 }
 0x869   :  { %v1394_v0 = vpop.eup %1393 }
 0x86a   :  { %v1396_v55 = vpop.eup %1395  ;;  %v1025_v30 = vmul.f32 %v1394_v0, %v1001_v39 }
 0x86b   :  { %v1024_v32 = vmul.f32 %v1396_v55, %v1000_v40 }
 0x86c   :  { %v1035_v1 = vmul.f32 %v1032_v51, %v1025_v30 }
 0x86d   :  { %v1034_v5 = vmul.f32 %v1028_v63, %v1024_v32 }
 0x86e   :  { %v1045_v10 = vadd.f32 %v1042_v6, %v1035_v1 }
 0x86f   :  { %v1044_v8 = vadd.f32 %v1038_v4, %v1034_v5 }
 0x871   :  { %1285 = vmatprep.mubr.msk.f32.mxu1 %vm33_vm0, %v1044_v8 }
 0x872   :  { %1286 = vmatmul.mubr.msk.f32.vlgmr.msra.gmra.mrb[6].mxu1 %vm33_vm0, %v1045_v10 }
 0x945   :  { %v1287_v14 = vpop.f32.mrb[6].mxu1 }
 0x946   :  { %v1131_v15 = vadd.f32 %v1287_v14, %v1158_v11  ;;  %v1125_v2 = vpop.f32.mrb[7].mxu1 }
 0x947   :  { %v1126_v3 = vadd.f32 %v1158_v11, %v1125_v2 }
 0x948   :  { %1135 = vst.msk [vmem:[%s1682_s3 + $0x8] sm:$0xff] %vm410_vm3, %v1131_v15 }
 0x949   :  { %1134 = vst.msk [vmem:[%s1682_s3] sm:$0xff] %vm410_vm3, %v1126_v3 }

</bundles_post_ra>
